<compile_context>
chip_gen: v7x
topology: tpu7x:2x2x1
jax: 0.10.0
libtpu: 0.0.40
codegen_flags: <defaults>
</compile_context>

<pallas_src>
import functools
from typing import NamedTuple, Optional

import jax
import jax.numpy as jnp
from jax.experimental import pallas as pl
from jax.experimental.pallas import tpu as pltpu


def _round_up(x, m):
    return ((x + m - 1) // m) * m


def _pick_tile(desired, total, align):
    """Largest multiple of `align` that is <= min(desired, total) and divides `total`.

    `total` is always a multiple of `align`, so `align` is a guaranteed fallback.
    """
    t = min(desired, total)
    t = max(align, (t // align) * align)
    while total % t != 0:
        t -= align
    return t


class PreparedWeight(NamedTuple):
    """Init-time-prepped weight: transposed to [D_in, D_out], padded, cast."""
    w: jax.Array      # [K_pad, N_pad]
    d_in: int
    d_out: int


def prepare_weight(weight, compute_dtype: Optional[jnp.dtype] = jnp.bfloat16):
    """One-time (parameter-init) prep of the torch-layout weight [D_out, D_in].

    Transposes to [D_in, D_out] (so the kernel does a plain x @ W_t matmul with
    no per-tile transpose), zero-pads both dims to multiples of 128, and casts
    to `compute_dtype` (bf16 by default) so HBM streams half the bytes.
    """
    d_out, d_in = weight.shape
    k_pad = _round_up(d_in, 128)
    n_pad = _round_up(d_out, 128)
    w_t = weight.T  # [D_in, D_out]
    if (k_pad, n_pad) != (d_in, d_out):
        w_t = jnp.pad(w_t, ((0, k_pad - d_in), (0, n_pad - d_out)))
    if compute_dtype is not None:
        w_t = w_t.astype(compute_dtype)
    return PreparedWeight(w=w_t, d_in=d_in, d_out=d_out)


# --------------------------------------------------------------------------- #
# Kernels
# --------------------------------------------------------------------------- #
def _apply_act(y, act_type):
    if act_type == "relu":
        return jnp.maximum(y, 0.0)
    if act_type == "sigmoid":
        return jax.nn.sigmoid(y)
    return y  # identity for any other act string (module only defines relu/sigmoid)


def _linear_act_single_kernel(x_ref, w_ref, o_ref, *, act_type):
    # Small-problem fast path: whole operands resident in VMEM, one MXU pass.
    y = jnp.dot(x_ref[...], w_ref[...], preferred_element_type=jnp.float32)
    o_ref[...] = _apply_act(y, act_type).astype(o_ref.dtype)


def _linear_act_tiled_kernel(x_ref, w_ref, o_ref, acc_ref, *, act_type):
    # x_ref:   (tile_b, tile_k)   activation tile (bf16 by default)
    # w_ref:   (tile_k, tile_n)   pre-transposed weight tile -> no XLU transpose
    # o_ref:   (tile_b, tile_n)   lane-dense output tile
    # acc_ref: (tile_b, tile_n)   f32 accumulator, resident across the K axis
    k = pl.program_id(2)

    @pl.when(k == 0)
    def _():
        acc_ref[...] = jnp.zeros_like(acc_ref)

    acc_ref[...] += jnp.dot(
        x_ref[...], w_ref[...], preferred_element_type=jnp.float32
    )

    @pl.when(k == pl.num_programs(2) - 1)
    def _():
        o_ref[...] = _apply_act(acc_ref[...], act_type).astype(o_ref.dtype)


# --------------------------------------------------------------------------- #
# Wrapper
# --------------------------------------------------------------------------- #
def passive_interactive_forward(
    x,
    weight,
    final_act_type="relu",
    *,
    compute_dtype: Optional[jnp.dtype] = jnp.bfloat16,
    out_dtype=None,
    tile_b=1024,
    tile_n=1024,
    tile_k=512,
    force_tiled=False,
):
    """act(x @ weight.T). x: [B, D_in]; weight: torch Linear layout or PreparedWeight."""
    if not isinstance(weight, PreparedWeight):
        # Convenience path; production code should call prepare_weight() once at init.
        weight = prepare_weight(weight, compute_dtype=compute_dtype)

    B, d_in = x.shape
    assert d_in == weight.d_in, "weight inner dim must match x features"
    d_out = weight.d_out
    w = weight.w
    K_pad, N_pad = w.shape

    out_dtype = out_dtype or x.dtype  # original dtype before any HBM-side cast

    # Cast x in HBM so the kernel streams the narrow dtype (matches prepped weight).
    if x.dtype != w.dtype:
        x = x.astype(w.dtype)

    xb = jnp.dtype(x.dtype).itemsize
    wb = jnp.dtype(w.dtype).itemsize
    ob = jnp.dtype(out_dtype).itemsize

    # Pad batch only to sublane granularity (8 for 32-bit, 16 for 16-bit), K to W's K_pad.
    sub = 8 if xb >= 4 else 16
    B_pad = _round_up(B, sub)
    if (B_pad, K_pad) != (B, d_in):
        x = jnp.pad(x, ((0, B_pad - B), (0, K_pad - d_in)))

    # ------------------------------------------------------------------ #
    # Small-problem fast path: skip the grid / accumulator machinery.
    # ------------------------------------------------------------------ #
    small_bytes = B_pad * K_pad * xb + K_pad * N_pad * wb + B_pad * N_pad * (ob + 4)
    if (not force_tiled) and small_bytes <= (4 << 20):
        out = pl.pallas_call(
            functools.partial(_linear_act_single_kernel, act_type=final_act_type),
            out_shape=jax.ShapeDtypeStruct((B_pad, N_pad), out_dtype),
        )(x, w)
        return out[:B, :d_out]

    # ------------------------------------------------------------------ #
    # Tiled path: 3-D grid (batch, out, K) with K (reduction) last.
    # ------------------------------------------------------------------ #
    tile_b = _pick_tile(tile_b, B_pad, sub)
    tile_n = _pick_tile(tile_n, N_pad, 128)
    tile_k = _pick_tile(tile_k, K_pad, 128)

    nb = B_pad // tile_b
    nn_ = N_pad // tile_n
    # v7x has 2 TensorCores: make sure there are >= 2 parallel blocks to shard.
    if nb * nn_ < 2 and N_pad >= 256:
        tile_n = _pick_tile(N_pad // 2, N_pad, 128)
        nn_ = N_pad // tile_n
    nk = K_pad // tile_k

    # VMEM budget: double-buffered x/W/out tiles + resident f32 accumulator.
    vmem_need = (
        2 * tile_b * tile_k * xb
        + 2 * tile_k * tile_n * wb
        + 2 * tile_b * tile_n * ob
        + tile_b * tile_n * 4
    )
    vmem_limit = int(min(64 * 1024 * 1024, max(32 * 1024 * 1024, 2 * vmem_need)))

    cost = pl.CostEstimate(
        flops=2 * B_pad * K_pad * N_pad,
        transcendentals=(B_pad * N_pad if final_act_type == "sigmoid" else 0),
        # Account for the nn_-fold x re-reads and nb-fold W re-reads.
        bytes_accessed=nn_ * B_pad * K_pad * xb + nb * N_pad * K_pad * wb + B_pad * N_pad * ob,
    )

    out = pl.pallas_call(
        functools.partial(_linear_act_tiled_kernel, act_type=final_act_type),
        out_shape=jax.ShapeDtypeStruct((B_pad, N_pad), out_dtype),
        grid_spec=pltpu.PrefetchScalarGridSpec(
            num_scalar_prefetch=0,
            grid=(nb, nn_, nk),  # reduction axis last
            in_specs=[
                pl.BlockSpec((tile_b, tile_k), lambda i, j, k: (i, k)),  # x tile
                pl.BlockSpec((tile_k, tile_n), lambda i, j, k: (k, j)),  # W_t tile
            ],
            out_specs=pl.BlockSpec((tile_b, tile_n), lambda i, j, k: (i, j)),
            scratch_shapes=[pltpu.VMEM((tile_b, tile_n), jnp.float32)],
        ),
        compiler_params=pltpu.CompilerParams(
            dimension_semantics=("parallel", "parallel", "arbitrary"),
            vmem_limit_bytes=vmem_limit,
        ),
        cost_estimate=cost,
    )(x, w)

    return out[:B, :d_out]


if __name__ == "__main__":
    # dims = [in_features, ..., out_features]; only first and last are used by the module.
    dims = [32, 16]
    batch = 8

    key = jax.random.PRNGKey(0)
    kx, kw, kx2, kw2 = jax.random.split(key, 4)

    x = jax.random.normal(kx, (batch, dims[0]), dtype=jnp.float32)
    # Deterministic init mimicking nn.Linear's uniform(-1/sqrt(fan_in), 1/sqrt(fan_in)).
    bound = 1.0 / (dims[0] ** 0.5)
    weight = jax.random.uniform(
        kw, (dims[-1], dims[0]), minval=-bound, maxval=bound, dtype=jnp.float32
    )
    ref = jnp.maximum(x @ weight.T, 0.0)

    # 1) Default path: bf16 operands in HBM, f32 accumulation, relu (fast path).
    w_prep = prepare_weight(weight)  # init-time: transpose + pad + bf16 cast
    out = jax.block_until_ready(passive_interactive_forward(x, w_prep, "relu"))
    assert out.shape == (batch, dims[-1])
    assert jnp.allclose(out, ref, atol=5e-2, rtol=5e-2)

    # 2) Exact-f32 path, relu.
    w_prep_f32 = prepare_weight(weight, compute_dtype=None)
    out_f32 = jax.block_until_ready(passive_interactive_forward(x, w_prep_f32, "relu"))
    assert jnp.allclose(out_f32, ref, atol=1e-4, rtol=1e-4)

    # 3) Sigmoid branch (the module's other final_act_type).
    out_sig = jax.block_until_ready(passive_interactive_forward(x, w_prep, "sigmoid"))
    ref_sig = jax.nn.sigmoid(x @ weight.T)
    assert jnp.allclose(out_sig, ref_sig, atol=5e-2, rtol=5e-2)

    # 4) Exercise the tiled (gridded, K-accumulating) path on a slightly larger layer.
    B2, D_in2, D_out2 = 64, 1024, 256
    x2 = jax.random.normal(kx2, (B2, D_in2), dtype=jnp.float32)
    b2 = 1.0 / (D_in2 ** 0.5)
    weight2 = jax.random.uniform(
        kw2, (D_out2, D_in2), minval=-b2, maxval=b2, dtype=jnp.float32
    )
    out2 = jax.block_until_ready(
        passive_interactive_forward(x2, prepare_weight(weight2), "relu", force_tiled=True)
    )
    ref2 = jnp.maximum(x2 @ weight2.T, 0.0)
    assert out2.shape == (B2, D_out2)
    assert jnp.allclose(out2, ref2, atol=5e-2, rtol=5e-2)

    print("KERNEL_OK")
</pallas_src>

<mosaic_0001>
module attributes {stable_mosaic.version = 11 : i64} {
  func.func @_linear_act_single_kernel(%arg0: memref<16x128xbf16, #tpu.memory_space<vmem>>, %arg1: memref<128x128xbf16, #tpu.memory_space<vmem>>, %arg2: memref<16x128xf32, #tpu.memory_space<vmem>>) attributes {dimension_semantics = [], scalar_prefetch = 0 : i64, scratch_operands = 0 : i64, tpu.core_type = #tpu.core_type<tc>} {
    %c0 = arith.constant 0 : index
    %c0_0 = arith.constant 0 : index
    %0 = vector.load %arg0[%c0, %c0_0] : memref<16x128xbf16, #tpu.memory_space<vmem>>, vector<16x128xbf16>
    %c0_1 = arith.constant 0 : index
    %c0_2 = arith.constant 0 : index
    %1 = vector.load %arg1[%c0_1, %c0_2] : memref<128x128xbf16, #tpu.memory_space<vmem>>, vector<128x128xbf16>
    %cst = arith.constant dense<0.000000e+00> : vector<16x128xf32>
    %2 = tpu.matmul %0, %1, %cst {dimension_numbers = #tpu.dot_dimension_numbers<[1], [0], [0], [1], [0, 0, 1, 1], [], []>} : vector<16x128xbf16>, vector<128x128xbf16>, vector<16x128xf32> -> vector<16x128xf32>
    %cst_3 = arith.constant 0.000000e+00 : f32
    %3 = vector.broadcast %cst_3 : f32 to vector<16x128xf32>
    %4 = arith.maximumf %2, %3 : vector<16x128xf32>
    %c0_4 = arith.constant 0 : index
    %c0_5 = arith.constant 0 : index
    %5 = vector.load %arg2[%c0_4, %c0_5] : memref<16x128xf32, #tpu.memory_space<vmem>>, vector<16x128xf32>
    tpu.vector_store %arg2[%c0_4, %c0_5], %4 {strides = array<i32>} : memref<16x128xf32, #tpu.memory_space<vmem>>, vector<16x128xf32>,
    return
  }
}

</mosaic_0001>

<bundles_post_ra>
// kernel: tpu_custom_call.1
= control target key start
LH: loop header
LB: loop body
LE: loop exit
PB: predicated region body
PF: predicated region fallthrough
CT: control target
= control target key end

     0   :  { %7 = vsyncpa [#allocation3], 0  ;;  %s364_s0 = inlined_call_operand.hbm [shape: bf16[16,128], index: 0, kind: input, shape index: {}]   ;;  %s365_s1 = inlined_call_operand.hbm [shape: bf16[128,128], index: 1, kind: input, shape index: {}]   ;;  %s366_s2 = inlined_call_operand.hbm [shape: f32[16,128], index: 2, kind: output, shape index: {}]  }
   0x1   :  { %8 = vsyncpa [#allocation6], 0 }
   0x2   :  { %9 = vsyncpa [#allocation4], 0  ;;  %s304_s9 = smov [#allocation2]   ;;  %s232_s13 = scalar_lea.hbm %s364_s0, 128 }
   0x3   :  { %s15_s10 = sshll.u32 %s304_s9, 4  ;;  %p233_p0 = scmp.ne.s32.totalorder %s364_s0, %s232_s13  ;;  %s16_s10 = int_to_ptr.vmem [resolvable:$true] %s15_s10 }
   0x4   :  { %p236_p1 = scmp.lt.u32.totalorder %s232_s13, %s364_s0 }
   0x6   :  { %p238_p2 = pnand %p236_p1, %p233_p0 }
   0x8   :  { %241 = shalt.err (!%p238_p2)
}
   0x9   :  { %s242_s18 = scalar_lea.vmem %s16_s10, 128  ;;  %p247_p4 = scmp.lt.s32.totalorder %s16_s10, %s16_s10 }
   0xa   :  { %p243_p3 = scmp.ne.s32.totalorder %s16_s10, %s242_s18  ;;  %p248_p5 = scmp.lt.s32.totalorder %s242_s18, %s242_s18 }
   0xc   :  { %p249_p6 = por %p248_p5, %p247_p4 }
   0xe   :  { %p250_p7 = pnand %p249_p6, %p243_p3 }
  0x10   :  { %253 = shalt.err (!%p250_p7)
}
  0x11   :  { %s305_s19 = smov 64   ;;  %s306_s20 = smov 4  }
  0x12   :  { %21 = dma.hbm_to_vmem [thread:$0]  %s364_s0, 128, %s16_s10, [#allocation3], %s305_s19, %s305_s19, %s306_s20  }
  0x13   :  { %s307_s23 = smov [#allocation5]   ;;  %s254_s27 = scalar_lea.hbm %s365_s1, 1024 }
  0x14   :  { %s27_s24 = sshll.u32 %s307_s23, 4  ;;  %p255_p8 = scmp.ne.s32.totalorder %s365_s1, %s254_s27  ;;  %s28_s24 = int_to_ptr.vmem [resolvable:$true] %s27_s24 }
  0x15   :  { %p258_p9 = scmp.lt.u32.totalorder %s254_s27, %s365_s1 }
  0x17   :  { %p260_p10 = pnand %p258_p9, %p255_p8 }
  0x19   :  { %263 = shalt.err (!%p260_p10)
}
  0x1a   :  { %s264_s4 = scalar_lea.vmem %s28_s24, 1024  ;;  %p269_p12 = scmp.lt.s32.totalorder %s28_s24, %s28_s24 }
  0x1b   :  { %p265_p11 = scmp.ne.s32.totalorder %s28_s24, %s264_s4  ;;  %p270_p13 = scmp.lt.s32.totalorder %s264_s4, %s264_s4 }
  0x1d   :  { %p271_p0 = por %p270_p13, %p269_p12 }
  0x1f   :  { %p272_p1 = pnand %p271_p0, %p265_p11 }
  0x21   :  { %275 = shalt.err (!%p272_p1)
}
  0x22   :  { %33 = dma.hbm_to_vmem [thread:$0]  %s365_s1, 1024, %s28_s24, [#allocation6], %s305_s19, %s305_s19, %s306_s20  }
  0x23   :  { %298 = dma.done.wait [#allocation3], 128  }
  0x24   :  { %299 = vsyncadd [#allocation3], 4294967168 }
  0x25   :  { %300 = dma.done.wait [#allocation6], 1024  }
  0x26   :  { %301 = vsyncadd [#allocation6], 4294966272  ;;  %v308_v0 = vmov 0.0   ;;  %vm309_vm0 = vmmov 0   ;;  %v223_v1 = vld [vmem:[#allocation5] sm:$0xff]   ;;  %v224_v2 = vld [vmem:[#allocation5 + $0x8] sm:$0xff]  }
  0x27   :  { %194 = vmatprep.subr.bf16.mxu0 %v308_v0  ;;  %210 = vmatprep.mubr.msk.bf16.mxu0 %vm309_vm0, %v308_v0  ;;  %v225_v3 = vld [vmem:[#allocation5 + $0x10] sm:$0xff]   ;;  %v226_v4 = vld [vmem:[#allocation5 + $0x18] sm:$0xff]   ;;  %v227_v5 = vld [vmem:[#allocation5 + $0x20] sm:$0xff]   ;;  %s310_s1 = smov [#allocation7]  }
  0x28   :  { %195 = vmatpush3.bf16.msra.mxu0 %v223_v1  ;;  %v228_v6 = vld [vmem:[#allocation5 + $0x28] sm:$0xff]   ;;  %v229_v7 = vld [vmem:[#allocation5 + $0x30] sm:$0xff]   ;;  %v230_v8 = vld [vmem:[#allocation5 + $0x38] sm:$0xff]   ;;  %s163_s6 = sshll.u32 %s310_s1, 4  ;;  %s164_s6 = int_to_ptr.vmem [resolvable:$true] %s163_s6 }
  0x29   :  { %196 = vmatprep.subr.bf16.mxu0 %v308_v0  ;;  %v231_v9 = vld [vmem:[#allocation2] sm:$0xff]   ;;  %s276_s7 = scalar_lea.vmem %s164_s6, 256  ;;  %p281_p3 = scmp.lt.s32.totalorder %s164_s6, %s164_s6 }
  0x2a   :  { %p277_p2 = scmp.ne.s32.totalorder %s164_s6, %s276_s7  ;;  %p282_p4 = scmp.lt.s32.totalorder %s276_s7, %s276_s7 }
  0x2c   :  { %197 = vmatpush3.bf16.msra.mxu0 %v224_v2  ;;  %p283_p5 = por %p282_p4, %p281_p3 }
  0x2d   :  { %198 = vmatprep.subr.bf16.mxu0 %v308_v0 }
  0x2e   :  { %p284_p6 = pnand %p283_p5, %p277_p2 }
  0x30   :  { %199 = vmatpush3.bf16.msra.mxu0 %v225_v3 }
  0x31   :  { %200 = vmatprep.subr.bf16.mxu0 %v308_v0 }
  0x34   :  { %201 = vmatpush3.bf16.msra.mxu0 %v226_v4 }
  0x35   :  { %202 = vmatprep.subr.bf16.mxu0 %v308_v0 }
  0x38   :  { %203 = vmatpush3.bf16.msra.mxu0 %v227_v5 }
  0x39   :  { %204 = vmatprep.subr.bf16.mxu0 %v308_v0 }
  0x3c   :  { %205 = vmatpush3.bf16.msra.mxu0 %v228_v6 }
  0x3d   :  { %206 = vmatprep.subr.bf16.mxu0 %v308_v0 }
  0x40   :  { %207 = vmatpush3.bf16.msra.mxu0 %v229_v7 }
  0x41   :  { %208 = vmatprep.subr.bf16.mxu0 %v308_v0 }
  0x44   :  { %209 = vmatpush3.bf16.msra.mxu0 %v230_v8 }
  0x47   :  { %211 = vmatmul.mubr.bf16.vlgmr.msra.gmra.mrb[0].mxu0 %v231_v9 }
 0x11a   :  { %v147_v10 = vpop.f32.mrb[0].mxu0 }
 0x11b   :  { %v154_v11 = vmax.f32 %v147_v10, 0.0  ;;  %v212_v12 = vpop.f32.mrb[1].mxu0 }
 0x11c   :  { %v150_v13 = vpop.f32.mrb[2].mxu0 }
 0x11d   :  { %156 = vst [vmem:[#allocation7] sm:$0xff] %v154_v11  ;;  %v155_v14 = vmax.f32 %v150_v13, 0.0  ;;  %v213_v15 = vpop.f32.mrb[3].mxu0 }
 0x11f   :  { %157 = vst [vmem:[#allocation7 + $0x8] sm:$0xff] %v155_v14 }
 0x120   :  { %287 = shalt.err (!%p284_p6)
}
 0x121   :  { %s288_s10 = scalar_lea.hbm %s366_s2, 256 }
 0x122   :  { %p289_p7 = scmp.ne.s32.totalorder %s366_s2, %s288_s10  ;;  %p292_p8 = scmp.lt.u32.totalorder %s288_s10, %s366_s2 }
 0x124   :  { %p294_p9 = pnand %p292_p8, %p289_p7 }
 0x126   :  { %297 = shalt.err (!%p294_p9)
}
 0x127   :  { %s311_s15 = smov 128   ;;  %s312_s16 = smov 8  }
 0x128   :  { %169 = dma.vmem_to_hbm [thread:$0]  %s164_s6, 256, %s366_s2, [#allocation4], %s311_s15, %s311_s15, %s312_s16  }
 0x129   :  { %302 = dma.done.wait [#allocation4], 256  }
 0x12a   :  { %303 = vsyncadd [#allocation4], 4294967040 }
 0x12b   :  { %173 = vsyncpa [#allocation3], 1 }
 0x12c   :  { %174 = vsyncpa [#allocation6], 1 }
 0x12d   :  { %175 = vsyncpa [#allocation4], 1 }

</bundles_post_ra>
